<compile_context>
chip_gen: v6e
topology: v6e:2x2x1
jax: 0.10.0
libtpu: 0.0.40
codegen_flags: <defaults>
</compile_context>

<pallas_src>
import functools

import jax
import jax.numpy as jnp
from jax.experimental import pallas as pl
from jax.experimental.pallas import tpu as pltpu

_IN_H = _IN_W = 28
_KSIZE = 7
_STRIDE = 3
_OH = _OW = 8                       # (28 - 7) // 3 + 1
_CONV_OUT = 4
_FLAT = _CONV_OUT * _OH * _OW       # 256
_LANE = 128
_VMEM_LIMIT = 48 * 1024 * 1024      # well above actual use, below v7x physical


def _round_up(x, m):
    return (x + m - 1) // m * m


# ----------------------------- Pallas kernel --------------------------------


def convnet_kernel(x_ref, wc_ref, bc_ref, w1_ref, b1_ref, w2_ref, b2_ref,
                   o_ref):
    """Fused conv(as matmul) -> square -> fc1 -> square -> fc2 for one tile.

    x_ref : (TN, 784)    flattened f32 images (cast to weight dtype in-kernel)
    wc_ref: (784, 256)   conv filter expanded to a dense matmul weight
    bc_ref: (1, 256)     conv bias broadcast over the 8x8 spatial positions (f32)
    w1_ref: (256, HP)    fc1 weight, (in, out) layout, hidden padded to 128
    b1_ref: (1, HP)      f32
    w2_ref: (HP, 128)    fc2 weight zero-padded to a full lane width
    b2_ref: (1, 128)     f32
    o_ref : (TN, 128)    lane-dense output (first `output` columns are valid)
    """
    # In-kernel cast of x (HBM stays f32; cast is a VPU op hidden under DMA).
    xa = x_ref[...].astype(wc_ref.dtype)
    # conv1 as one MXU matmul + bias, squared on the f32 accumulator.
    h = jnp.dot(xa, wc_ref[...], preferred_element_type=jnp.float32)
    h = h + bc_ref[...]
    h = h * h
    # fc1 + square.
    h = jnp.dot(h.astype(w1_ref.dtype), w1_ref[...],
                preferred_element_type=jnp.float32)
    h = h + b1_ref[...]
    h = h * h
    # fc2 (lane-padded output).
    o = jnp.dot(h.astype(w2_ref.dtype), w2_ref[...],
                preferred_element_type=jnp.float32)
    o_ref[...] = (o + b2_ref[...]).astype(o_ref.dtype)


# --------------------------- weight preparation ------------------------------


def _expand_conv_weight(wc):
    """(4, 1, 7, 7) conv weight -> dense (784, 256) matmul weight.

    Column c*64 + oh*8 + ow contains the filter taps of output channel c
    placed at the flat-image indices of the stride-3 receptive field of
    spatial position (oh, ow); zeros elsewhere.  This reproduces PyTorch's
    x.view(-1, 256) flattening of the (N, 4, 8, 8) conv output.
    """
    c_out = wc.shape[0]
    c, oh, ow, kh, kw = jnp.meshgrid(
        jnp.arange(c_out), jnp.arange(_OH), jnp.arange(_OW),
        jnp.arange(_KSIZE), jnp.arange(_KSIZE), indexing="ij")
    rows = (oh * _STRIDE + kh) * _IN_W + (ow * _STRIDE + kw)
    cols = c * (_OH * _OW) + oh * _OW + ow
    vals = wc[c, 0, kh, kw]
    w_big = jnp.zeros((_IN_H * _IN_W, c_out * _OH * _OW), dtype=wc.dtype)
    return w_big.at[rows.reshape(-1), cols.reshape(-1)].set(vals.reshape(-1))


def prepare_params(params, compute_dtype=jnp.bfloat16):
    """One-time (per parameter set) weight prep.  Hoisted out of the forward.

    Biases stay f32 (they are added onto f32 MXU accumulators in the kernel).
    """
    wc, bc, w1, b1, w2, b2 = (params[k] for k in
                              ("conv1_w", "conv1_b", "fc1_w", "fc1_b",
                               "fc2_w", "fc2_b"))
    hidden = w1.shape[1]
    out_dim = w2.shape[1]
    hid_pad = _round_up(hidden, _LANE)
    out_pad = _round_up(out_dim, _LANE)

    wc_big = _expand_conv_weight(wc).astype(compute_dtype)          # (784, 256)
    bc_big = jnp.repeat(bc, _OH * _OW).reshape(1, _FLAT)             # (1, 256) f32
    w1_p = jnp.zeros((_FLAT, hid_pad), compute_dtype).at[:, :hidden].set(
        w1.astype(compute_dtype))
    b1_p = jnp.zeros((1, hid_pad), jnp.float32).at[:, :hidden].set(b1)
    w2_p = jnp.zeros((hid_pad, out_pad), compute_dtype).at[:hidden, :out_dim].set(
        w2.astype(compute_dtype))
    b2_p = jnp.zeros((1, out_pad), jnp.float32).at[:, :out_dim].set(b2)

    prepped = {"wc": wc_big, "bc": bc_big, "w1": w1_p, "b1": b1_p,
               "w2": w2_p, "b2": b2_p}
    return prepped, out_dim


# ------------------------------ host wrapper --------------------------------


@functools.partial(jax.jit, static_argnames=("out_dim", "tile_n"))
def convnet_forward(x, prepped, *, out_dim=10, tile_n=1024):
    """Forward pass matching the PyTorch ConvNet.forward semantics.

    x: (N, 1, 28, 28) float32.  Returns (N, out_dim) float32.
    """
    n = x.shape[0]
    out_pad = prepped["w2"].shape[1]
    compute_dtype = prepped["w1"].dtype

    # Tile sizing: bf16 packs 16 rows/sublane-group, f32 packs 8.  Cap the
    # tile at ceil(N/2) so there are >= 2 grid steps whenever possible (v7x
    # megacore sharding of the "parallel" batch axis).
    mult = 16 if compute_dtype == jnp.bfloat16 else 8
    half = _round_up(-(-n // 2), mult)
    tn = max(mult, min(tile_n, _round_up(n, mult), half))
    grid = (pl.cdiv(n, tn),)

    # No host-side pad / cast: x stays f32 and the ragged last tile (if any)
    # is masked by Pallas (OOB output rows dropped; rows are independent).
    x_flat = x.reshape(n, _IN_H * _IN_W)

    def _resident(arr):
        # Whole-array block, same index every grid step -> stays in VMEM.
        return pl.BlockSpec(arr.shape, lambda i: (0, 0))

    out = pl.pallas_call(
        convnet_kernel,
        out_shape=jax.ShapeDtypeStruct((n, out_pad), jnp.float32),
        grid=grid,
        in_specs=[
            pl.BlockSpec((tn, _IN_H * _IN_W), lambda i: (i, 0)),   # x tile
            _resident(prepped["wc"]),
            _resident(prepped["bc"]),
            _resident(prepped["w1"]),
            _resident(prepped["b1"]),
            _resident(prepped["w2"]),
            _resident(prepped["b2"]),
        ],
        out_specs=pl.BlockSpec((tn, out_pad), lambda i: (i, 0)),
        compiler_params=pltpu.CompilerParams(
            dimension_semantics=("parallel",),
            vmem_limit_bytes=_VMEM_LIMIT),
    )(x_flat, prepped["wc"], prepped["bc"], prepped["w1"], prepped["b1"],
      prepped["w2"], prepped["b2"])

    return out[:, :out_dim]


# ------------------------------ test harness --------------------------------


def init_params(key, hidden=64, output=10):
    """Deterministic synthetic parameters matching ConvNet.__init__ shapes."""
    ks = jax.random.split(key, 6)
    scale_c = 1.0 / jnp.sqrt(1.0 * _KSIZE * _KSIZE)
    scale_1 = 1.0 / jnp.sqrt(256.0)
    scale_2 = 1.0 / jnp.sqrt(float(hidden))
    return {
        # conv1: Conv2d(1, 4, kernel_size=7, stride=3) -> (4, 1, 7, 7), (4,)
        "conv1_w": jax.random.uniform(ks[0], (4, 1, _KSIZE, _KSIZE),
                                      jnp.float32, -scale_c, scale_c),
        "conv1_b": jax.random.uniform(ks[1], (4,), jnp.float32,
                                      -scale_c, scale_c),
        # fc1: Linear(256, hidden), stored (in, out) for row-major matmul
        "fc1_w": jax.random.uniform(ks[2], (256, hidden), jnp.float32,
                                    -scale_1, scale_1),
        "fc1_b": jax.random.uniform(ks[3], (hidden,), jnp.float32,
                                    -scale_1, scale_1),
        # fc2: Linear(hidden, output)
        "fc2_w": jax.random.uniform(ks[4], (hidden, output), jnp.float32,
                                    -scale_2, scale_2),
        "fc2_b": jax.random.uniform(ks[5], (output,), jnp.float32,
                                    -scale_2, scale_2),
    }


def _reference_forward(x, params):
    """Pure-JAX reference mirroring the PyTorch forward."""
    wc, bc = params["conv1_w"], params["conv1_b"]
    conv = jax.lax.conv_general_dilated(
        x, wc, window_strides=(_STRIDE, _STRIDE), padding="VALID",
        dimension_numbers=("NCHW", "OIHW", "NCHW"))
    conv = conv + bc[None, :, None, None]
    conv = conv * conv
    flat = conv.reshape(x.shape[0], _FLAT)
    h = flat @ params["fc1_w"] + params["fc1_b"]
    h = h * h
    return h @ params["fc2_w"] + params["fc2_b"]


if __name__ == "__main__":
    key = jax.random.PRNGKey(0)
    k_param, k_x, k_x2 = jax.random.split(key, 3)
    params = init_params(k_param, hidden=64, output=10)

    # Small test: batch=2 at the module's implied input shape (N, 1, 28, 28),
    # f32 weight path for a tight numerical check (single partial block).
    prep_f32, out_dim = prepare_params(params, compute_dtype=jnp.float32)
    x = jax.random.normal(k_x, (2, 1, 28, 28), dtype=jnp.float32)
    out = jax.block_until_ready(convnet_forward(x, prep_f32, out_dim=out_dim))
    ref = _reference_forward(x, params)
    assert out.shape == (2, 10)
    assert jnp.allclose(out, ref, atol=1e-3, rtol=1e-3), \
        float(jnp.max(jnp.abs(out - ref)))

    # Larger batch with the default bf16 weight path: exercises a multi-step
    # grid (tile_n=128 -> 3 blocks, ragged last tile of 44 rows handled by
    # partial-block masking, no host-side pad).  bf16 squares twice, so use a
    # looser tolerance (documented precision contract of the bf16 path).
    prep_bf16, out_dim = prepare_params(params)          # bf16 default
    x2 = jax.random.normal(k_x2, (300, 1, 28, 28), dtype=jnp.float32)
    out2 = jax.block_until_ready(
        convnet_forward(x2, prep_bf16, out_dim=out_dim, tile_n=128))
    ref2 = _reference_forward(x2, params)
    assert out2.shape == (300, 10)
    assert jnp.allclose(out2, ref2, atol=5e-2, rtol=5e-2), \
        float(jnp.max(jnp.abs(out2 - ref2)))

    # Default tile path (tile capped at ceil(N/2) -> 2 grid steps, megacore).
    out3 = jax.block_until_ready(convnet_forward(x2, prep_bf16, out_dim=out_dim))
    assert out3.shape == (300, 10)
    assert jnp.allclose(out3, ref2, atol=5e-2, rtol=5e-2)

    print("KERNEL_OK")
</pallas_src>

<mosaic_0001>
module attributes {stable_mosaic.version = 11 : i64} {
  func.func @convnet_kernel(%arg0: i32, %arg1: memref<8x784xf32, #tpu.memory_space<vmem>>, %arg2: memref<784x256xf32, #tpu.memory_space<vmem>>, %arg3: memref<1x256xf32, #tpu.memory_space<vmem>>, %arg4: memref<256x128xf32, #tpu.memory_space<vmem>>, %arg5: memref<1x128xf32, #tpu.memory_space<vmem>>, %arg6: memref<128x128xf32, #tpu.memory_space<vmem>>, %arg7: memref<1x128xf32, #tpu.memory_space<vmem>>, %arg8: memref<8x128xf32, #tpu.memory_space<vmem>>) attributes {dimension_semantics = [#tpu.dimension_semantics<parallel>], iteration_bounds = array<i64: 1>, scalar_prefetch = 0 : i64, scratch_operands = 0 : i64, tpu.core_type = #tpu.core_type<tc>, window_params = [{transform_indices = @transform_0, window_bounds = array<i64: 8, 784>}, {pipeline_mode = #tpu.pipeline_mode<synchronous>, transform_indices = @transform_1, window_bounds = array<i64: 784, 256>}, {pipeline_mode = #tpu.pipeline_mode<synchronous>, transform_indices = @transform_2, window_bounds = array<i64: 1, 256>}, {pipeline_mode = #tpu.pipeline_mode<synchronous>, transform_indices = @transform_3, window_bounds = array<i64: 256, 128>}, {pipeline_mode = #tpu.pipeline_mode<synchronous>, transform_indices = @transform_4, window_bounds = array<i64: 1, 128>}, {pipeline_mode = #tpu.pipeline_mode<synchronous>, transform_indices = @transform_5, window_bounds = array<i64: 128, 128>}, {pipeline_mode = #tpu.pipeline_mode<synchronous>, transform_indices = @transform_6, window_bounds = array<i64: 1, 128>}, {transform_indices = @transform_7, window_bounds = array<i64: 8, 128>}]} {
    %c0 = arith.constant 0 : index
    %c0_0 = arith.constant 0 : index
    %0 = vector.load %arg1[%c0, %c0_0] : memref<8x784xf32, #tpu.memory_space<vmem>>, vector<8x784xf32>
    %c0_1 = arith.constant 0 : index
    %c0_2 = arith.constant 0 : index
    %1 = vector.load %arg2[%c0_1, %c0_2] : memref<784x256xf32, #tpu.memory_space<vmem>>, vector<784x256xf32>
    %cst = arith.constant dense<0.000000e+00> : vector<8x256xf32>
    %2 = tpu.matmul %0, %1, %cst {dimension_numbers = #tpu.dot_dimension_numbers<[1], [0], [0], [1], [0, 0, 1, 1], [], []>} : vector<8x784xf32>, vector<784x256xf32>, vector<8x256xf32> -> vector<8x256xf32>
    %c0_3 = arith.constant 0 : index
    %c0_4 = arith.constant 0 : index
    %3 = vector.load %arg3[%c0_3, %c0_4] : memref<1x256xf32, #tpu.memory_space<vmem>>, vector<1x256xf32>
    %4 = vector.broadcast %3 : vector<1x256xf32> to vector<8x256xf32>
    %5 = arith.addf %2, %4 : vector<8x256xf32>
    %6 = arith.mulf %5, %5 : vector<8x256xf32>
    %c0_5 = arith.constant 0 : index
    %c0_6 = arith.constant 0 : index
    %7 = vector.load %arg4[%c0_5, %c0_6] : memref<256x128xf32, #tpu.memory_space<vmem>>, vector<256x128xf32>
    %cst_7 = arith.constant dense<0.000000e+00> : vector<8x128xf32>
    %8 = tpu.matmul %6, %7, %cst_7 {dimension_numbers = #tpu.dot_dimension_numbers<[1], [0], [0], [1], [0, 0, 1, 1], [], []>} : vector<8x256xf32>, vector<256x128xf32>, vector<8x128xf32> -> vector<8x128xf32>
    %c0_8 = arith.constant 0 : index
    %c0_9 = arith.constant 0 : index
    %9 = vector.load %arg5[%c0_8, %c0_9] : memref<1x128xf32, #tpu.memory_space<vmem>>, vector<1x128xf32>
    %10 = vector.broadcast %9 : vector<1x128xf32> to vector<8x128xf32>
    %11 = arith.addf %8, %10 : vector<8x128xf32>
    %12 = arith.mulf %11, %11 : vector<8x128xf32>
    %c0_10 = arith.constant 0 : index
    %c0_11 = arith.constant 0 : index
    %13 = vector.load %arg6[%c0_10, %c0_11] : memref<128x128xf32, #tpu.memory_space<vmem>>, vector<128x128xf32>
    %cst_12 = arith.constant dense<0.000000e+00> : vector<8x128xf32>
    %14 = tpu.matmul %12, %13, %cst_12 {dimension_numbers = #tpu.dot_dimension_numbers<[1], [0], [0], [1], [0, 0, 1, 1], [], []>} : vector<8x128xf32>, vector<128x128xf32>, vector<8x128xf32> -> vector<8x128xf32>
    %c0_13 = arith.constant 0 : index
    %c0_14 = arith.constant 0 : index
    %15 = vector.load %arg7[%c0_13, %c0_14] : memref<1x128xf32, #tpu.memory_space<vmem>>, vector<1x128xf32>
    %16 = vector.broadcast %15 : vector<1x128xf32> to vector<8x128xf32>
    %17 = arith.addf %14, %16 : vector<8x128xf32>
    %c0_15 = arith.constant 0 : index
    %c0_16 = arith.constant 0 : index
    %18 = vector.load %arg8[%c0_15, %c0_16] : memref<8x128xf32, #tpu.memory_space<vmem>>, vector<8x128xf32>
    tpu.vector_store %arg8[%c0_15, %c0_16], %17 {strides = array<i32>} : memref<8x128xf32, #tpu.memory_space<vmem>>, vector<8x128xf32>,
    return
  }
  func.func @transform_0(%arg0: i32) -> (i32, i32) {
    %c0_i32 = arith.constant 0 : i32
    %c0_i32_0 = arith.constant 0 : i32
    return %arg0, %c0_i32 : i32, i32
  }
  func.func @transform_1(%arg0: i32) -> (i32, i32) {
    %c0_i32 = arith.constant 0 : i32
    %c0_i32_0 = arith.constant 0 : i32
    %c0_i32_1 = arith.constant 0 : i32
    return %c0_i32, %c0_i32_0 : i32, i32
  }
  func.func @transform_2(%arg0: i32) -> (i32, i32) {
    %c0_i32 = arith.constant 0 : i32
    %c0_i32_0 = arith.constant 0 : i32
    %c0_i32_1 = arith.constant 0 : i32
    return %c0_i32, %c0_i32_0 : i32, i32
  }
  func.func @transform_3(%arg0: i32) -> (i32, i32) {
    %c0_i32 = arith.constant 0 : i32
    %c0_i32_0 = arith.constant 0 : i32
    %c0_i32_1 = arith.constant 0 : i32
    return %c0_i32, %c0_i32_0 : i32, i32
  }
  func.func @transform_4(%arg0: i32) -> (i32, i32) {
    %c0_i32 = arith.constant 0 : i32
    %c0_i32_0 = arith.constant 0 : i32
    %c0_i32_1 = arith.constant 0 : i32
    return %c0_i32, %c0_i32_0 : i32, i32
  }
  func.func @transform_5(%arg0: i32) -> (i32, i32) {
    %c0_i32 = arith.constant 0 : i32
    %c0_i32_0 = arith.constant 0 : i32
    %c0_i32_1 = arith.constant 0 : i32
    return %c0_i32, %c0_i32_0 : i32, i32
  }
  func.func @transform_6(%arg0: i32) -> (i32, i32) {
    %c0_i32 = arith.constant 0 : i32
    %c0_i32_0 = arith.constant 0 : i32
    %c0_i32_1 = arith.constant 0 : i32
    return %c0_i32, %c0_i32_0 : i32, i32
  }
  func.func @transform_7(%arg0: i32) -> (i32, i32) {
    %c0_i32 = arith.constant 0 : i32
    %c0_i32_0 = arith.constant 0 : i32
    return %arg0, %c0_i32 : i32, i32
  }
}

</mosaic_0001>

<bundles_post_ra>
// kernel: convnet_forward.1
= control target key start
LH: loop header
LB: loop body
LE: loop exit
PB: predicated region body
PF: predicated region fallthrough
CT: control target
= control target key end

     0   :  { %12 = vsyncpa [#allocation3], 0  ;;  %s1230_s0 = inlined_call_operand.vmem [shape: f32[2,784], index: 0, kind: input, shape index: {}]   ;;  %s1231_s1 = inlined_call_operand.hbm [shape: f32[784,256], index: 1, kind: input, shape index: {}]   ;;  %s1232_s2 = inlined_call_operand.vmem [shape: f32[1,256], index: 2, kind: input, shape index: {}]   ;;  %s1233_s3 = inlined_call_operand.hbm [shape: f32[256,128], index: 3, kind: input, shape index: {}]   ;;  %s1234_s4 = inlined_call_operand.vmem [shape: f32[1,128], index: 4, kind: input, shape index: {}]   ;;  %s1235_s5 = inlined_call_operand.vmem [shape: f32[128,128], index: 5, kind: input, shape index: {}]   ;;  %s1236_s6 = inlined_call_operand.vmem [shape: f32[1,128], index: 6, kind: input, shape index: {}]   ;;  %s1237_s7 = inlined_call_operand.hbm [shape: f32[2,128], index: 7, kind: output, shape index: {}]  }
   0x1   :  { %13 = vsyncpa [#allocation6], 0 }
   0x2   :  { %14 = vsyncpa [#allocation4], 0  ;;  %s1047_s24 = smov [#allocation2]  }
   0x3   :  { %s22_s25 = sshll.u32 %s1047_s24, 4  ;;  %s23_s25 = int_to_ptr.vmem [resolvable:$true] %s22_s25 }
   0x4   :  { %s989_s26 = scalar_lea.vmem %s23_s25, 25088  ;;  %p994_p1 = scmp.lt.s32.totalorder %s23_s25, %s23_s25 }
   0x5   :  { %p990_p0 = scmp.ne.s32.totalorder %s23_s25, %s989_s26  ;;  %p995_p2 = scmp.lt.s32.totalorder %s989_s26, %s989_s26 }
   0x7   :  { %p996_p3 = por %p995_p2, %p994_p1 }
   0x9   :  { %p997_p4 = pnand %p996_p3, %p990_p0 }
   0xb   :  { %1000 = shalt.err (!%p997_p4)
}
   0xc   :  { %s1048_s27 = smov 256   ;;  %s1049_s28 = smov 16  }
   0xd   :  { %28 = dma.hbm_to_vmem [thread:$0]  %s1231_s1, 25088, %s23_s25, [#allocation3], %s1048_s27, %s1048_s27, %s1049_s28  }
   0xe   :  { %s1050_s8 = smov [#allocation5]  }
   0xf   :  { %s36_s9 = sshll.u32 %s1050_s8, 4  ;;  %s37_s9 = int_to_ptr.vmem [resolvable:$true] %s36_s9 }
  0x10   :  { %s1009_s10 = scalar_lea.vmem %s37_s9, 4096  ;;  %p1014_p6 = scmp.lt.s32.totalorder %s37_s9, %s37_s9 }
  0x11   :  { %p1010_p5 = scmp.ne.s32.totalorder %s37_s9, %s1009_s10  ;;  %p1015_p7 = scmp.lt.s32.totalorder %s1009_s10, %s1009_s10 }
  0x13   :  { %p1016_p8 = por %p1015_p7, %p1014_p6 }
  0x15   :  { %p1017_p9 = pnand %p1016_p8, %p1010_p5 }
  0x17   :  { %1020 = shalt.err (!%p1017_p9)
}
  0x18   :  { %s1051_s11 = smov 128   ;;  %s1052_s12 = smov 8  }
  0x19   :  { %42 = dma.hbm_to_vmem [thread:$0]  %s1233_s3, 4096, %s37_s9, [#allocation6], %s1051_s11, %s1051_s11, %s1052_s12  }
  0x1a   :  { %1041 = dma.done.wait [#allocation3], 25088  }
  0x1b   :  { %1042 = vsyncadd [#allocation3], 4294942208 }
  0x1c   :  { %1043 = dma.done.wait [#allocation6], 4096  }
  0x1d   :  { %1044 = vsyncadd [#allocation6], 4294963200  ;;  %v94_v0 = vld [vmem:[#allocation2 + $0xf8] sm:$0xff]  ;;  %v93_v1 = vld [vmem:[#allocation2 + $0xf0] sm:$0xff]  ;;  %vm356_vm0 = vcmask 130048   ;;  %vm1055_vm1 = vmmov 0  }
  0x1e   :  { %v92_v2 = vld [vmem:[#allocation2 + $0xe8] sm:$0xff]  ;;  %359 = vmatprep.subr.mxu0 %v94_v0  ;;  %v158_v3 = vld [vmem:[#allocation2 + $0x2f8] sm:$0xff]  ;;  %v91_v4 = vld [vmem:[#allocation2 + $0xe0] sm:$0xff] }
  0x1f   :  { %v157_v5 = vld [vmem:[#allocation2 + $0x2f0] sm:$0xff]  ;;  %360 = vmatpush1.msra.mxu0 %v93_v1  ;;  %430 = vmatprep.subr.mxu1 %v158_v3  ;;  %v90_v6 = vld [vmem:[#allocation2 + $0xd8] sm:$0xff]  ;;  %v156_v7 = vld [vmem:[#allocation2 + $0x2e8] sm:$0xff] }
  0x20   :  { %361 = vmatprep.subr.mxu0 %v92_v2  ;;  %431 = vmatpush1.msra.mxu1 %v157_v5  ;;  %v89_v8 = vld [vmem:[#allocation2 + $0xd0] sm:$0xff]  ;;  %v155_v9 = vld [vmem:[#allocation2 + $0x2e0] sm:$0xff]  ;;  %v154_v10 = vld [vmem:[#allocation2 + $0x2d8] sm:$0xff] }
  0x21   :  { %362 = vmatpush1.msra.mxu0 %v91_v4  ;;  %432 = vmatprep.subr.mxu1 %v156_v7  ;;  %v88_v11 = vld [vmem:[#allocation2 + $0xc8] sm:$0xff]  ;;  %v153_v12 = vld [vmem:[#allocation2 + $0x2d0] sm:$0xff]  ;;  %v87_v13 = vld [vmem:[#allocation2 + $0xc0] sm:$0xff] }
  0x22   :  { %363 = vmatprep.subr.mxu0 %v90_v6  ;;  %433 = vmatpush1.msra.mxu1 %v155_v9  ;;  %v152_v14 = vld [vmem:[#allocation2 + $0x2c8] sm:$0xff]  ;;  %v86_v15 = vld [vmem:[#allocation2 + $0xb8] sm:$0xff]  ;;  %v151_v16 = vld [vmem:[#allocation2 + $0x2c0] sm:$0xff] }
  0x23   :  { %364 = vmatpush1.msra.mxu0 %v89_v8  ;;  %434 = vmatprep.subr.mxu1 %v154_v10  ;;  %v85_v17 = vld [vmem:[#allocation2 + $0xb0] sm:$0xff]  ;;  %v150_v18 = vld [vmem:[#allocation2 + $0x2b8] sm:$0xff]  ;;  %v84_v19 = vld [vmem:[#allocation2 + $0xa8] sm:$0xff] }
  0x24   :  { %365 = vmatprep.subr.mxu0 %v88_v11  ;;  %435 = vmatpush1.msra.mxu1 %v153_v12  ;;  %v149_v20 = vld [vmem:[#allocation2 + $0x2b0] sm:$0xff]  ;;  %v83_v21 = vld [vmem:[#allocation2 + $0xa0] sm:$0xff]  ;;  %v148_v22 = vld [vmem:[#allocation2 + $0x2a8] sm:$0xff] }
  0x25   :  { %366 = vmatpush1.msra.mxu0 %v87_v13  ;;  %436 = vmatprep.subr.mxu1 %v152_v14  ;;  %v82_v23 = vld [vmem:[#allocation2 + $0x98] sm:$0xff]  ;;  %v147_v24 = vld [vmem:[#allocation2 + $0x2a0] sm:$0xff]  ;;  %v81_v25 = vld [vmem:[#allocation2 + $0x90] sm:$0xff] }
  0x26   :  { %367 = vmatprep.subr.mxu0 %v86_v15  ;;  %437 = vmatpush1.msra.mxu1 %v151_v16  ;;  %v146_v26 = vld [vmem:[#allocation2 + $0x298] sm:$0xff]  ;;  %v80_v27 = vld [vmem:[#allocation2 + $0x88] sm:$0xff]  ;;  %v145_v28 = vld [vmem:[#allocation2 + $0x290] sm:$0xff] }
  0x27   :  { %368 = vmatpush1.msra.mxu0 %v85_v17  ;;  %438 = vmatprep.subr.mxu1 %v150_v18  ;;  %v79_v29 = vld [vmem:[#allocation2 + $0x80] sm:$0xff]  ;;  %v144_v30 = vld [vmem:[#allocation2 + $0x288] sm:$0xff]  ;;  %v78_v31 = vld [vmem:[#allocation2 + $0x78] sm:$0xff] }
  0x28   :  { %369 = vmatprep.subr.mxu0 %v84_v19  ;;  %439 = vmatpush1.msra.mxu1 %v149_v20  ;;  %v143_v32 = vld [vmem:[#allocation2 + $0x280] sm:$0xff]  ;;  %v77_v33 = vld [vmem:[#allocation2 + $0x70] sm:$0xff]  ;;  %v142_v34 = vld [vmem:[#allocation2 + $0x278] sm:$0xff] }
  0x29   :  { %370 = vmatpush1.msra.mxu0 %v83_v21  ;;  %440 = vmatprep.subr.mxu1 %v148_v22  ;;  %v76_v35 = vld [vmem:[#allocation2 + $0x68] sm:$0xff]  ;;  %v141_v36 = vld [vmem:[#allocation2 + $0x270] sm:$0xff]  ;;  %v75_v37 = vld [vmem:[#allocation2 + $0x60] sm:$0xff] }
  0x2a   :  { %371 = vmatprep.subr.mxu0 %v82_v23  ;;  %441 = vmatpush1.msra.mxu1 %v147_v24  ;;  %v140_v38 = vld [vmem:[#allocation2 + $0x268] sm:$0xff]  ;;  %v74_v39 = vld [vmem:[#allocation2 + $0x58] sm:$0xff]  ;;  %v139_v40 = vld [vmem:[#allocation2 + $0x260] sm:$0xff] }
  0x2b   :  { %372 = vmatpush1.msra.mxu0 %v81_v25  ;;  %442 = vmatprep.subr.mxu1 %v146_v26  ;;  %v73_v41 = vld [vmem:[#allocation2 + $0x50] sm:$0xff]  ;;  %v138_v42 = vld [vmem:[#allocation2 + $0x258] sm:$0xff]  ;;  %v72_v43 = vld [vmem:[#allocation2 + $0x48] sm:$0xff] }
  0x2c   :  { %373 = vmatprep.subr.mxu0 %v80_v27  ;;  %443 = vmatpush1.msra.mxu1 %v145_v28  ;;  %v137_v44 = vld [vmem:[#allocation2 + $0x250] sm:$0xff]  ;;  %v71_v45 = vld [vmem:[#allocation2 + $0x40] sm:$0xff]  ;;  %v136_v46 = vld [vmem:[#allocation2 + $0x248] sm:$0xff]  ;;  %v261_v27 = vlaneseq  ;;  %v1053_v28 = vmov 1983009808  }
  0x2d   :  { %374 = vmatpush1.msra.mxu0 %v79_v29  ;;  %444 = vmatprep.subr.mxu1 %v144_v30  ;;  %v70_v47 = vld [vmem:[#allocation2 + $0x38] sm:$0xff]  ;;  %v135_v48 = vld [vmem:[#allocation2 + $0x240] sm:$0xff]  ;;  %v69_v49 = vld [vmem:[#allocation2 + $0x30] sm:$0xff]  ;;  %v284_v29 = vunpack.c.l.s4 %v1053_v28 }
  0x2e   :  { %375 = vmatprep.subr.mxu0 %v78_v31  ;;  %445 = vmatpush1.msra.mxu1 %v143_v32  ;;  %v134_v50 = vld [vmem:[#allocation2 + $0x238] sm:$0xff]  ;;  %v68_v51 = vld [vmem:[#allocation2 + $0x28] sm:$0xff]  ;;  %v133_v52 = vld [vmem:[#allocation2 + $0x230] sm:$0xff] }
  0x2f   :  { %376 = vmatpush1.msra.mxu0 %v77_v33  ;;  %446 = vmatprep.subr.mxu1 %v142_v34  ;;  %v67_v53 = vld [vmem:[#allocation2 + $0x20] sm:$0xff]  ;;  %v132_v54 = vld [vmem:[#allocation2 + $0x228] sm:$0xff]  ;;  %v66_v55 = vld [vmem:[#allocation2 + $0x18] sm:$0xff] }
  0x30   :  { %377 = vmatprep.subr.mxu0 %v76_v35  ;;  %447 = vmatpush1.msra.mxu1 %v141_v36  ;;  %v131_v56 = vld [vmem:[#allocation2 + $0x220] sm:$0xff]  ;;  %v65_v57 = vld [vmem:[#allocation2 + $0x10] sm:$0xff]  ;;  %v130_v58 = vld [vmem:[#allocation2 + $0x218] sm:$0xff] }
  0x31   :  { %378 = vmatpush1.msra.mxu0 %v75_v37  ;;  %448 = vmatprep.subr.mxu1 %v140_v38  ;;  %v64_v59 = vld [vmem:[#allocation2 + $0x8] sm:$0xff]  ;;  %v129_v60 = vld [vmem:[#allocation2 + $0x210] sm:$0xff]  ;;  %v63_v61 = vld [vmem:[#allocation2] sm:$0xff]  ;;  %v1105_v38 = vshrl.u32 %v261_v27, 7 }
  0x32   :  { %379 = vmatprep.subr.mxu0 %v74_v39  ;;  %449 = vmatpush1.msra.mxu1 %v139_v40  ;;  %v128_v62 = vld [vmem:[#allocation2 + $0x208] sm:$0xff]  ;;  %v126_v63 = vld [vmem:[#allocation2 + $0x1f8] sm:$0xff]  ;;  %v127_v0 = vld [vmem:[#allocation2 + $0x200] sm:$0xff]  ;;  %v285_v39 = vunpack.c.0.s8 %v284_v29 }
  0x33   :  { %380 = vmatpush1.msra.mxu0 %v73_v41  ;;  %450 = vmatprep.subr.mxu1 %v138_v42  ;;  %v125_v1 = vld [vmem:[#allocation2 + $0x1f0] sm:$0xff]  ;;  %v190_v2 = vld [vmem:[#allocation2 + $0x3f8] sm:$0xff]  ;;  %v124_v3 = vld [vmem:[#allocation2 + $0x1e8] sm:$0xff] }
  0x34   :  { %381 = vmatprep.subr.mxu0 %v72_v43  ;;  %451 = vmatpush1.msra.mxu1 %v137_v44  ;;  %v189_v4 = vld [vmem:[#allocation2 + $0x3f0] sm:$0xff]  ;;  %v123_v5 = vld [vmem:[#allocation2 + $0x1e0] sm:$0xff]  ;;  %v188_v6 = vld [vmem:[#allocation2 + $0x3e8] sm:$0xff] }
  0x35   :  { %382 = vmatpush1.msra.mxu0 %v71_v45  ;;  %452 = vmatprep.subr.mxu1 %v136_v46  ;;  %v122_v7 = vld [vmem:[#allocation2 + $0x1d8] sm:$0xff]  ;;  %v187_v8 = vld [vmem:[#allocation2 + $0x3e0] sm:$0xff]  ;;  %v121_v9 = vld [vmem:[#allocation2 + $0x1d0] sm:$0xff] }
  0x36   :  { %383 = vmatprep.subr.mxu0 %v70_v47  ;;  %453 = vmatpush1.msra.mxu1 %v135_v48  ;;  %v186_v10 = vld [vmem:[#allocation2 + $0x3d8] sm:$0xff]  ;;  %v120_v11 = vld [vmem:[#allocation2 + $0x1c8] sm:$0xff]  ;;  %v185_v12 = vld [vmem:[#allocation2 + $0x3d0] sm:$0xff] }
  0x37   :  { %384 = vmatpush1.msra.mxu0 %v69_v49  ;;  %454 = vmatprep.subr.mxu1 %v134_v50  ;;  %v119_v13 = vld [vmem:[#allocation2 + $0x1c0] sm:$0xff]  ;;  %v184_v14 = vld [vmem:[#allocation2 + $0x3c8] sm:$0xff]  ;;  %v118_v15 = vld [vmem:[#allocation2 + $0x1b8] sm:$0xff]  ;;  %v1114_v50 = vsub.s32 %v285_v39, %v1105_v38 }
  0x38   :  { %385 = vmatprep.subr.mxu0 %v68_v51  ;;  %455 = vmatpush1.msra.mxu1 %v133_v52  ;;  %v183_v16 = vld [vmem:[#allocation2 + $0x3c0] sm:$0xff]  ;;  %v117_v17 = vld [vmem:[#allocation2 + $0x1b0] sm:$0xff]  ;;  %v116_v18 = vld [vmem:[#allocation2 + $0x1a8] sm:$0xff] }
  0x39   :  { %386 = vmatpush1.msra.mxu0 %v67_v53  ;;  %456 = vmatprep.subr.mxu1 %v132_v54  ;;  %v182_v19 = vld [vmem:[#allocation2 + $0x3b8] sm:$0xff]  ;;  %v115_v20 = vld [vmem:[#allocation2 + $0x1a0] sm:$0xff]  ;;  %v181_v21 = vld [vmem:[#allocation2 + $0x3b0] sm:$0xff] }
  0x3a   :  { %387 = vmatprep.subr.mxu0 %v66_v55  ;;  %457 = vmatpush1.msra.mxu1 %v131_v56  ;;  %v114_v22 = vld [vmem:[#allocation2 + $0x198] sm:$0xff]  ;;  %v180_v23 = vld [vmem:[#allocation2 + $0x3a8] sm:$0xff]  ;;  %v179_v24 = vld [vmem:[#allocation2 + $0x3a0] sm:$0xff] }
  0x3b   :  { %388 = vmatpush1.msra.mxu0 %v65_v57  ;;  %458 = vmatprep.subr.mxu1 %v130_v58  ;;  %v113_v25 = vld [vmem:[#allocation2 + $0x190] sm:$0xff]  ;;  %v178_v26 = vld [vmem:[#allocation2 + $0x398] sm:$0xff]  ;;  %v112_v30 = vld [vmem:[#allocation2 + $0x188] sm:$0xff] }
  0x3c   :  { %389 = vmatprep.subr.mxu0 %v64_v59  ;;  %459 = vmatpush1.msra.mxu1 %v129_v60  ;;  %v177_v31 = vld [vmem:[#allocation2 + $0x390] sm:$0xff]  ;;  %v111_v32 = vld [vmem:[#allocation2 + $0x180] sm:$0xff]  ;;  %v176_v33 = vld [vmem:[#allocation2 + $0x388] sm:$0xff] }
  0x3d   :  { %390 = vmatpush1.msra.mxu0 %v63_v61  ;;  %460 = vmatprep.subr.mxu1 %v128_v62  ;;  %v110_v34 = vld [vmem:[#allocation2 + $0x178] sm:$0xff]  ;;  %v175_v35 = vld [vmem:[#allocation2 + $0x380] sm:$0xff]  ;;  %v109_v36 = vld [vmem:[#allocation2 + $0x170] sm:$0xff] }
  0x3e   :  { %391 = vmatprep.subr.mxu0 %v126_v63  ;;  %461 = vmatpush1.msra.mxu1 %v127_v0  ;;  %v174_v37 = vld [vmem:[#allocation2 + $0x378] sm:$0xff]  ;;  %v108_v40 = vld [vmem:[#allocation2 + $0x168] sm:$0xff]  ;;  %v173_v41 = vld [vmem:[#allocation2 + $0x370] sm:$0xff] }
  0x3f   :  { %392 = vmatpush2.msra.mxu0 %v125_v1  ;;  %462 = vmatprep.subr.mxu1 %v190_v2  ;;  %v107_v42 = vld [vmem:[#allocation2 + $0x160] sm:$0xff]  ;;  %v172_v43 = vld [vmem:[#allocation2 + $0x368] sm:$0xff]  ;;  %v106_v44 = vld [vmem:[#allocation2 + $0x158] sm:$0xff] }
  0x40   :  { %393 = vmatprep.subr.mxu0 %v124_v3  ;;  %463 = vmatpush2.msra.mxu1 %v189_v4  ;;  %v105_v45 = vld [vmem:[#allocation2 + $0x150] sm:$0xff]  ;;  %v171_v46 = vld [vmem:[#allocation2 + $0x360] sm:$0xff]  ;;  %v170_v47 = vld [vmem:[#allocation2 + $0x358] sm:$0xff] }
  0x41   :  { %394 = vmatpush2.msra.mxu0 %v123_v5  ;;  %464 = vmatprep.subr.mxu1 %v188_v6  ;;  %v969_v48 = vld [vmem:[%s1230_s0] ss:$14 sps:$4 sm:$0xff]   ;;  %v971_v49 = vld [vmem:[%s1230_s0 + $0x1c] ss:$14 sps:$4 sm:$0xff]   ;;  %v973_v61 = vld [vmem:[%s1230_s0 + $0x4] ss:$14 sps:$4 sm:$0xff]  }
  0x42   :  { %395 = vmatprep.subr.mxu0 %v122_v7  ;;  %465 = vmatpush2.msra.mxu1 %v187_v8  ;;  %v104_v51 = vld [vmem:[#allocation2 + $0x148] sm:$0xff]  ;;  %v169_v52 = vld [vmem:[#allocation2 + $0x350] sm:$0xff]  ;;  %v103_v53 = vld [vmem:[#allocation2 + $0x140] sm:$0xff]  ;;  %v289_v59 = vrot.slane %v969_v48, %v1114_v50  ;;  %v303_v60 = vrot.slane %v971_v49, %v1114_v50  ;;  %v296_v8 = vrot.slane %v973_v61, %v1114_v50 }
  0x43   :  { %396 = vmatpush2.msra.mxu0 %v121_v9  ;;  %466 = vmatprep.subr.mxu1 %v186_v10  ;;  %v168_v54 = vld [vmem:[#allocation2 + $0x348] sm:$0xff]  ;;  %v102_v55 = vld [vmem:[#allocation2 + $0x138] sm:$0xff]  ;;  %v101_v56 = vld [vmem:[#allocation2 + $0x130] sm:$0xff] }
  0x44   :  { %397 = vmatprep.subr.mxu0 %v120_v11  ;;  %467 = vmatpush2.msra.mxu1 %v185_v12  ;;  %v167_v57 = vld [vmem:[#allocation2 + $0x340] sm:$0xff]  ;;  %v166_v58 = vld [vmem:[#allocation2 + $0x338] sm:$0xff]  ;;  %v100_v63 = vld [vmem:[#allocation2 + $0x128] sm:$0xff]  ;;  %v312_v7 = vcombine.high %v289_v59, %v303_v60 }
  0x45   :  { %398 = vmatpush2.msra.mxu0 %v119_v13  ;;  %468 = vmatprep.subr.mxu1 %v184_v14  ;;  %v974_v62 = vld [vmem:[%s1230_s0 + $0x20] ss:$14 sps:$4 sm:$0xff]   ;;  %v98_v3 = vld [vmem:[#allocation2 + $0x118] sm:$0xff]  ;;  %v311_v13 = vcombine.low %v289_v59, %v303_v60 }
  0x46   :  { %399 = vmatprep.subr.mxu0 %v118_v15  ;;  %469 = vmatpush2.msra.mxu1 %v183_v16  ;;  %v165_v0 = vld [vmem:[#allocation2 + $0x330] sm:$0xff]  ;;  %v99_v1 = vld [vmem:[#allocation2 + $0x120] sm:$0xff]  ;;  %v164_v2 = vld [vmem:[#allocation2 + $0x328] sm:$0xff]  ;;  %v310_v9 = vrot.slane %v974_v62, %v1114_v50 }
  0x47   :  { %400 = vmatpush2.msra.mxu0 %v117_v17  ;;  %470 = vmatprep.subr.mxu1 %v182_v19  ;;  %v163_v4 = vld [vmem:[#allocation2 + $0x320] sm:$0xff]  ;;  %v97_v5 = vld [vmem:[#allocation2 + $0x110] sm:$0xff]  ;;  %v162_v6 = vld [vmem:[#allocation2 + $0x318] sm:$0xff] }
  0x48   :  { %401 = vmatprep.subr.mxu0 %v116_v18  ;;  %471 = vmatpush2.msra.mxu1 %v181_v21  ;;  %v96_v10 = vld [vmem:[#allocation2 + $0x108] sm:$0xff]  ;;  %v95_v11 = vld [vmem:[#allocation2 + $0x100] sm:$0xff]  ;;  %v161_v12 = vld [vmem:[#allocation2 + $0x310] sm:$0xff]  ;;  %v314_v17 = vcombine.high %v296_v8, %v310_v9  ;;  %v313_v19 = vcombine.low %v296_v8, %v310_v9 }
  0x49   :  { %402 = vmatpush2.msra.mxu0 %v115_v20  ;;  %472 = vmatprep.subr.mxu1 %v180_v23  ;;  %v160_v14 = vld [vmem:[#allocation2 + $0x308] sm:$0xff]  ;;  %v222_v15 = vld [vmem:[#allocation2 + $0x4f8] sm:$0xff]  ;;  %v159_v16 = vld [vmem:[#allocation2 + $0x300] sm:$0xff] }
  0x4a   :  { %403 = vmatprep.subr.mxu0 %v114_v22  ;;  %473 = vmatpush2.msra.mxu1 %v179_v24  ;;  %v221_v18 = vld [vmem:[#allocation2 + $0x4f0] sm:$0xff]  ;;  %v220_v20 = vld [vmem:[#allocation2 + $0x4e8] sm:$0xff]  ;;  %v219_v21 = vld [vmem:[#allocation2 + $0x4e0] sm:$0xff] }
  0x4b   :  { %404 = vmatpush2.msra.mxu0 %v113_v25  ;;  %474 = vmatprep.subr.mxu1 %v178_v26  ;;  %v218_v22 = vld [vmem:[#allocation2 + $0x4d8] sm:$0xff]  ;;  %v217_v23 = vld [vmem:[#allocation2 + $0x4d0] sm:$0xff]  ;;  %v216_v25 = vld [vmem:[#allocation2 + $0x4c8] sm:$0xff] }
  0x4c   :  { %405 = vmatprep.subr.mxu0 %v112_v30  ;;  %475 = vmatpush2.msra.mxu1 %v177_v31  ;;  %v258_v24 = vld [vmem:[#allocation2 + $0x618] sm:$0xff]  ;;  %v257_v26 = vld [vmem:[#allocation2 + $0x610] sm:$0xff]  ;;  %v256_v27 = vld [vmem:[#allocation2 + $0x608] sm:$0xff] }
  0x4d   :  { %406 = vmatpush2.msra.mxu0 %v111_v32  ;;  %476 = vmatprep.subr.mxu1 %v176_v33  ;;  %v975_v28 = vld [vmem:[%s1230_s0 + $0x8] ss:$14 sps:$4 sm:$0xff]   ;;  %v977_v29 = vld [vmem:[%s1230_s0 + $0xc] ss:$14 sps:$4 sm:$0x33]   ;;  %v255_v30 = vld [vmem:[#allocation2 + $0x600] sm:$0xff] }
  0x4e   :  { %407 = vmatprep.subr.mxu0 %v110_v34  ;;  %477 = vmatpush2.msra.mxu1 %v175_v35  ;;  %v215_v31 = vld [vmem:[#allocation2 + $0x4c0] sm:$0xff]  ;;  %v980_v33 = vld [vmem:[%s1230_s0 + $0x28] ss:$14 sps:$4 sm:$0x33]   ;;  %v214_v34 = vld [vmem:[#allocation2 + $0x4b8] sm:$0xff]  ;;  %v1139_v35 = vrot.slane %v975_v28, %v1114_v50 }
  0x4f   :  { %408 = vmatpush2.msra.mxu0 %v109_v36  ;;  %478 = vmatprep.subr.mxu1 %v174_v37  ;;  %v978_v32 = vld [vmem:[%s1230_s0 + $0x24] ss:$14 sps:$4 sm:$0xff]   ;;  %v332_v36 = vrot.slane %v977_v29, %v1114_v50  ;;  %v208_v48 = vld [vmem:[#allocation2 + $0x488] sm:$0xff]  ;;  %v194_v62 = vld [vmem:[#allocation2 + $0x418] sm:$0xff] }
  0x50   :  { %409 = vmatprep.subr.mxu0 %v108_v40  ;;  %479 = vmatpush2.msra.mxu1 %v173_v41  ;;  %v213_v37 = vld [vmem:[#allocation2 + $0x4b0] sm:$0xff]  ;;  %v1143_v39 = vrot.slane %v978_v32, %v1114_v50  ;;  %v346_v40 = vrot.slane %v980_v33, %v1114_v50  ;;  %v212_v41 = vld [vmem:[#allocation2 + $0x4a8] sm:$0xff]  ;;  %v207_v49 = vld [vmem:[#allocation2 + $0x480] sm:$0xff] }
  0x51   :  { %410 = vmatpush2.msra.mxu0 %v107_v42  ;;  %480 = vmatprep.subr.mxu1 %v172_v43  ;;  %v1054_v42 = vmov 0.0   ;;  %v211_v43 = vld [vmem:[#allocation2 + $0x4a0] sm:$0xff]  ;;  %v206_v50 = vld [vmem:[#allocation2 + $0x478] sm:$0xff]  ;;  %v197_v59 = vld [vmem:[#allocation2 + $0x430] sm:$0xff] }
  0x52   :  { %411 = vmatprep.subr.mxu0 %v106_v44  ;;  %481 = vmatpush2.msra.mxu1 %v171_v46  ;;  %v348_v44 = vcombine.high %v1139_v35, %v1143_v39  ;;  %v210_v46 = vld [vmem:[#allocation2 + $0x498] sm:$0xff]  ;;  %v196_v60 = vld [vmem:[#allocation2 + $0x428] sm:$0xff]  ;;  %v195_v61 = vld [vmem:[#allocation2 + $0x420] sm:$0xff] }
  0x53   :  { %412 = vmatpush2.msra.mxu0 %v105_v45  ;;  %482 = vmatprep.subr.mxu1 %v170_v47  ;;  %v349_v45 = vcombine.low %v332_v36, %v346_v40  ;;  %v209_v47 = vld [vmem:[#allocation2 + $0x490] sm:$0xff]  ;;  %v248_v8 = vld [vmem:[#allocation2 + $0x5c8] sm:$0xff]  ;;  %v247_v9 = vld [vmem:[#allocation2 + $0x5c0] sm:$0xff] }
  0x54   :  { %413 = vmatprep.subr.mxu0 %v104_v51  ;;  %483 = vmatpush2.msra.mxu1 %v169_v52  ;;  %v205_v51 = vld [vmem:[#allocation2 + $0x470] sm:$0xff]  ;;  %v204_v52 = vld [vmem:[#allocation2 + $0x468] sm:$0xff]  ;;  %v227_v29 = vld [vmem:[#allocation2 + $0x520] sm:$0xff] }
  0x55   :  { %414 = vmatpush2.msra.mxu0 %v103_v53  ;;  %484 = vmatprep.subr.mxu1 %v168_v54  ;;  %v203_v53 = vld [vmem:[#allocation2 + $0x460] sm:$0xff]  ;;  %v202_v54 = vld [vmem:[#allocation2 + $0x458] sm:$0xff]  ;;  %v228_v28 = vld [vmem:[#allocation2 + $0x528] sm:$0xff] }
  0x56   :  { %415 = vmatprep.subr.mxu0 %v102_v55  ;;  %485 = vmatpush2.msra.mxu1 %v167_v57  ;;  %v201_v55 = vld [vmem:[#allocation2 + $0x450] sm:$0xff]  ;;  %v199_v57 = vld [vmem:[#allocation2 + $0x440] sm:$0xff]  ;;  %v224_v32 = vld [vmem:[#allocation2 + $0x508] sm:$0xff] }
  0x57   :  { %416 = vmatpush2.msra.mxu0 %v101_v56  ;;  %486 = vmatprep.subr.mxu1 %v166_v58  ;;  %v200_v56 = vld [vmem:[#allocation2 + $0x448] sm:$0xff]  ;;  %v198_v58 = vld [vmem:[#allocation2 + $0x438] sm:$0xff]  ;;  %v223_v33 = vld [vmem:[#allocation2 + $0x500] sm:$0xff] }
  0x58   :  { %417 = vmatprep.subr.mxu0 %v100_v63  ;;  %487 = vmatpush2.msra.mxu1 %v165_v0  ;;  %v193_v63 = vld [vmem:[#allocation2 + $0x410] sm:$0xff]  ;;  %v192_v0 = vld [vmem:[#allocation2 + $0x408] sm:$0xff]  ;;  %v676_v36 = vld [vmem:[#allocation5 + $0xf8] sm:$0xff] }
  0x59   :  { %418 = vmatpush2.msra.mxu0 %v99_v1  ;;  %488 = vmatprep.subr.mxu1 %v164_v2  ;;  %v191_v1 = vld [vmem:[#allocation2 + $0x400] sm:$0xff]  ;;  %v254_v2 = vld [vmem:[#allocation2 + $0x5f8] sm:$0xff]  ;;  %v675_v40 = vld [vmem:[#allocation5 + $0xf0] sm:$0xff] }
  0x5a   :  { %419 = vmatprep.subr.mxu0 %v98_v3  ;;  %489 = vmatpush2.msra.mxu1 %v163_v4  ;;  %v253_v3 = vld [vmem:[#allocation2 + $0x5f0] sm:$0xff]  ;;  %v252_v4 = vld [vmem:[#allocation2 + $0x5e8] sm:$0xff] }
  0x5b   :  { %420 = vmatpush2.msra.mxu0 %v97_v5  ;;  %490 = vmatprep.subr.mxu1 %v162_v6  ;;  %v251_v5 = vld [vmem:[#allocation2 + $0x5e0] sm:$0xff]  ;;  %v250_v6 = vld [vmem:[#allocation2 + $0x5d8] sm:$0xff] }
  0x5c   :  { %421 = vmatprep.subr.mxu0 %v96_v10  ;;  %423 = vmatprep.mubr.f32.mxu0 %v312_v7  ;;  %v249_v7 = vld [vmem:[#allocation2 + $0x5d0] sm:$0xff]  ;;  %v246_v10 = vld [vmem:[#allocation2 + $0x5b8] sm:$0xff] }
  0x5d   :  { %422 = vmatpush2.msra.mxu0 %v95_v11  ;;  %491 = vmatpush2.msra.mxu1 %v161_v12  ;;  %v245_v11 = vld [vmem:[#allocation2 + $0x5b0] sm:$0xff]  ;;  %v244_v12 = vld [vmem:[#allocation2 + $0x5a8] sm:$0xff] }
  0x5e   :  { %424 = vmatmul.mubr.f32.vlgmr.msra.gmra.mxu0 %v311_v13  ;;  %492 = vmatprep.subr.mxu1 %v160_v14  ;;  %v243_v13 = vld [vmem:[#allocation2 + $0x5a0] sm:$0xff]  ;;  %v242_v14 = vld [vmem:[#allocation2 + $0x598] sm:$0xff] }
  0x5f   :  { %501 = vmatprep.subr.mxu0 %v222_v15  ;;  %493 = vmatpush2.msra.mxu1 %v159_v16  ;;  %v241_v15 = vld [vmem:[#allocation2 + $0x590] sm:$0xff]  ;;  %v240_v16 = vld [vmem:[#allocation2 + $0x588] sm:$0xff] }
  0x60   :  { %494 = vmatprep.mubr.f32.mxu1 %v314_v17  ;;  %502 = vmatpush1.msra.mxu0 %v221_v18  ;;  %v239_v17 = vld [vmem:[#allocation2 + $0x580] sm:$0xff]  ;;  %v238_v18 = vld [vmem:[#allocation2 + $0x578] sm:$0xff] }
  0x61   :  { %495 = vmatmul.mubr.f32.vlgmr.msra.gmra.mxu1 %v313_v19  ;;  %503 = vmatprep.subr.mxu0 %v220_v20  ;;  %v237_v19 = vld [vmem:[#allocation2 + $0x570] sm:$0xff]  ;;  %v236_v20 = vld [vmem:[#allocation2 + $0x568] sm:$0xff] }
  0x62   :  { %504 = vmatpush1.msra.mxu0 %v219_v21  ;;  %600 = vmatprep.subr.mxu1 %v258_v24  ;;  %v235_v21 = vld [vmem:[#allocation2 + $0x560] sm:$0xff]  ;;  %v232_v24 = vld [vmem:[#allocation2 + $0x548] sm:$0xff] }
  0x63   :  { %505 = vmatprep.subr.mxu0 %v218_v22  ;;  %601 = vmatpush1.msra.mxu1 %v257_v26  ;;  %v234_v22 = vld [vmem:[#allocation2 + $0x558] sm:$0xff] }
  0x64   :  { %506 = vmatpush1.msra.mxu0 %v217_v23  ;;  %602 = vmatprep.subr.mxu1 %v256_v27  ;;  %v233_v23 = vld [vmem:[#allocation2 + $0x550] sm:$0xff]  ;;  %v230_v26 = vld [vmem:[#allocation2 + $0x538] sm:$0xff] }
  0x65   :  { %507 = vmatprep.subr.mxu0 %v216_v25  ;;  %603 = vmatpush1.msra.mxu1 %v255_v30  ;;  %v231_v25 = vld [vmem:[#allocation2 + $0x540] sm:$0xff]  ;;  %v229_v27 = vld [vmem:[#allocation2 + $0x530] sm:$0xff]  ;;  %v226_v30 = vld [vmem:[#allocation2 + $0x518] sm:$0xff] }
  0x66   :  { %508 = vmatpush1.msra.mxu0 %v215_v31  ;;  %636 = vmatprep.mubr.f32.mxu1 %v1054_v42  ;;  %v225_v31 = vld [vmem:[#allocation2 + $0x510] sm:$0xff] }
  0x67   :  { %509 = vmatprep.subr.mxu0 %v214_v34  ;;  %565 = vmatprep.mubr.f32.mxu0 %v348_v44  ;;  %v347_v34 = vcombine.low %v1139_v35, %v1143_v39  ;;  %v658_v44 = vld [vmem:[#allocation5 + $0x68] sm:$0xff]  ;;  %v656_v35 = vld [vmem:[#allocation5 + $0x58] sm:$0xff]  ;;  %v671_v39 = vld [vmem:[#allocation5 + $0xd0] sm:$0xff] }
  0x68   :  { %510 = vmatpush1.msra.mxu0 %v213_v37  ;;  %867 = vmatmul.mubr.msk.f32.vlgmr.msra.gmra.mxu1 %vm356_vm0, %v349_v45  ;;  %v660_v37 = vld [vmem:[#allocation5 + $0x78] sm:$0xff]  ;;  %v673_v45 = vld [vmem:[#allocation5 + $0xe0] sm:$0xff] }
  0x69   :  { %511 = vmatprep.subr.mxu0 %v212_v41  ;;  %870 = vmatprep.subr.mxu1 %v676_v36  ;;  %v659_v41 = vld [vmem:[#allocation5 + $0x70] sm:$0xff]  ;;  %v762_v36 = vld [vmem:[%s1235_s5 + $0x38] sm:$0xff] }
  0x6a   :  { %512 = vmatpush1.msra.mxu0 %v211_v43  ;;  %871 = vmatpush3.msra.mxu1 %v660_v37  ;;  %v674_v43 = vld [vmem:[#allocation5 + $0xe8] sm:$0xff]  ;;  %v761_v37 = vld [vmem:[%s1235_s5 + $0x30] sm:$0xff] }
  0x6b   :  { %513 = vmatprep.subr.mxu0 %v210_v46  ;;  %872 = vmatprep.subr.mxu1 %v675_v40  ;;  %v657_v46 = vld [vmem:[#allocation5 + $0x60] sm:$0xff]  ;;  %v760_v40 = vld [vmem:[%s1235_s5 + $0x28] sm:$0xff] }
  0x6c   :  { %514 = vmatpush1.msra.mxu0 %v209_v47  ;;  %873 = vmatpush3.msra.mxu1 %v659_v41  ;;  %v672_v47 = vld [vmem:[#allocation5 + $0xd8] sm:$0xff]  ;;  %v759_v41 = vld [vmem:[%s1235_s5 + $0x20] sm:$0xff] }
  0x6d   :  { %515 = vmatprep.subr.mxu0 %v208_v48  ;;  %874 = vmatprep.subr.mxu1 %v674_v43  ;;  %v655_v48 = vld [vmem:[#allocation5 + $0x50] sm:$0xff]  ;;  %v758_v43 = vld [vmem:[%s1235_s5 + $0x18] sm:$0xff] }
  0x6e   :  { %516 = vmatpush1.msra.mxu0 %v207_v49  ;;  %875 = vmatpush3.msra.mxu1 %v658_v44  ;;  %v670_v49 = vld [vmem:[#allocation5 + $0xc8] sm:$0xff]  ;;  %v757_v44 = vld [vmem:[%s1235_s5 + $0x10] sm:$0xff] }
  0x6f   :  { %517 = vmatprep.subr.mxu0 %v206_v50  ;;  %876 = vmatprep.subr.mxu1 %v673_v45  ;;  %v654_v50 = vld [vmem:[#allocation5 + $0x48] sm:$0xff] }
  0x70   :  { %518 = vmatpush1.msra.mxu0 %v205_v51  ;;  %877 = vmatpush3.msra.mxu1 %v657_v46  ;;  %v669_v51 = vld [vmem:[#allocation5 + $0xc0] sm:$0xff]  ;;  %v756_v45 = vld [vmem:[%s1235_s5 + $0x8] sm:$0xff] }
  0x71   :  { %519 = vmatprep.subr.mxu0 %v204_v52  ;;  %878 = vmatprep.subr.mxu1 %v672_v47  ;;  %v653_v52 = vld [vmem:[#allocation5 + $0x40] sm:$0xff] }
  0x72   :  { %520 = vmatpush1.msra.mxu0 %v203_v53  ;;  %879 = vmatpush3.msra.mxu1 %v656_v35  ;;  %v668_v53 = vld [vmem:[#allocation5 + $0xb8] sm:$0xff]  ;;  %v755_v46 = vld [vmem:[%s1235_s5] sm:$0xff] }
  0x73   :  { %521 = vmatprep.subr.mxu0 %v202_v54  ;;  %880 = vmatprep.subr.mxu1 %v671_v39  ;;  %v652_v54 = vld [vmem:[#allocation5 + $0x38] sm:$0xff]  ;;  %v868_v35 = vld [vmem:[%s1234_s4] ss:$0 sm:$0xff] }
  0x74   :  { %522 = vmatpush1.msra.mxu0 %v201_v55  ;;  %881 = vmatpush3.msra.mxu1 %v655_v48  ;;  %v667_v55 = vld [vmem:[#allocation5 + $0xb0] sm:$0xff] }
  0x75   :  { %523 = vmatprep.subr.mxu0 %v200_v56  ;;  %882 = vmatprep.subr.mxu1 %v670_v49  ;;  %v651_v56 = vld [vmem:[#allocation5 + $0x30] sm:$0xff] }
  0x76   :  { %524 = vmatpush1.msra.mxu0 %v199_v57  ;;  %883 = vmatpush3.msra.mxu1 %v654_v50  ;;  %v666_v57 = vld [vmem:[#allocation5 + $0xa8] sm:$0xff] }
  0x77   :  { %525 = vmatprep.subr.mxu0 %v198_v58  ;;  %884 = vmatprep.subr.mxu1 %v669_v51  ;;  %v650_v58 = vld [vmem:[#allocation5 + $0x28] sm:$0xff]  ;;  %v869_v51 = vld [vmem:[%s1236_s6] ss:$0 sm:$0xff] }
  0x78   :  { %526 = vmatpush1.msra.mxu0 %v197_v59  ;;  %885 = vmatpush3.msra.mxu1 %v653_v52  ;;  %v665_v59 = vld [vmem:[#allocation5 + $0xa0] sm:$0xff] }
  0x79   :  { %527 = vmatprep.subr.mxu0 %v196_v60  ;;  %886 = vmatprep.subr.mxu1 %v668_v53  ;;  %v649_v60 = vld [vmem:[#allocation5 + $0x20] sm:$0xff] }
  0x7a   :  { %528 = vmatpush1.msra.mxu0 %v195_v61  ;;  %887 = vmatpush3.msra.mxu1 %v652_v54  ;;  %v664_v61 = vld [vmem:[#allocation5 + $0x98] sm:$0xff] }
  0x7b   :  { %529 = vmatprep.subr.mxu0 %v194_v62  ;;  %888 = vmatprep.subr.mxu1 %v667_v55  ;;  %v648_v62 = vld [vmem:[#allocation5 + $0x18] sm:$0xff] }
  0x7c   :  { %530 = vmatpush1.msra.mxu0 %v193_v63  ;;  %889 = vmatpush3.msra.mxu1 %v651_v56  ;;  %v663_v63 = vld [vmem:[#allocation5 + $0x90] sm:$0xff] }
  0x7d   :  { %531 = vmatprep.subr.mxu0 %v192_v0  ;;  %890 = vmatprep.subr.mxu1 %v666_v57  ;;  %v647_v0 = vld [vmem:[#allocation5 + $0x10] sm:$0xff] }
  0x7e   :  { %532 = vmatpush1.msra.mxu0 %v191_v1  ;;  %891 = vmatpush3.msra.mxu1 %v650_v58  ;;  %v662_v1 = vld [vmem:[#allocation5 + $0x88] sm:$0xff] }
  0x7f   :  { %533 = vmatprep.subr.mxu0 %v254_v2  ;;  %892 = vmatprep.subr.mxu1 %v665_v59  ;;  %v646_v2 = vld [vmem:[#allocation5 + $0x8] sm:$0xff] }
  0x80   :  { %534 = vmatpush2.msra.mxu0 %v253_v3  ;;  %893 = vmatpush3.msra.mxu1 %v649_v60  ;;  %v661_v3 = vld [vmem:[#allocation5 + $0x80] sm:$0xff] }
  0x81   :  { %535 = vmatprep.subr.mxu0 %v252_v4  ;;  %894 = vmatprep.subr.mxu1 %v664_v61  ;;  %v645_v4 = vld [vmem:[#allocation5] sm:$0xff] }
  0x82   :  { %536 = vmatpush2.msra.mxu0 %v251_v5  ;;  %895 = vmatpush3.msra.mxu1 %v648_v62  ;;  %v263_v5 = vsub.s32 0, %v1105_v38 }
  0x83   :  { %537 = vmatprep.subr.mxu0 %v250_v6  ;;  %896 = vmatprep.subr.mxu1 %v663_v63  ;;  %v259_v6 = vld [vmem:[%s1232_s2] sm:$0x3] }
  0x84   :  { %538 = vmatpush2.msra.mxu0 %v249_v7  ;;  %897 = vmatpush3.msra.mxu1 %v647_v0  ;;  %v267_v7 = vsub.s32 1, %v1105_v38 }
  0x85   :  { %539 = vmatprep.subr.mxu0 %v248_v8  ;;  %898 = vmatprep.subr.mxu1 %v662_v1 }
  0x86   :  { %540 = vmatpush2.msra.mxu0 %v247_v9  ;;  %899 = vmatpush3.msra.mxu1 %v646_v2  ;;  %v264_v9 = vrot.slane %v259_v6, %v263_v5 }
  0x87   :  { %541 = vmatprep.subr.mxu0 %v246_v10  ;;  %900 = vmatprep.subr.mxu1 %v661_v3  ;;  %v268_v10 = vrot.slane %v259_v6, %v267_v7 }
  0x88   :  { %542 = vmatpush2.msra.mxu0 %v245_v11  ;;  %901 = vmatpush3.msra.mxu1 %v645_v4 }
  0x89   :  { %543 = vmatprep.subr.mxu0 %v244_v12  ;;  %922 = vmatprep.subr.mxu1 %v1054_v42 }
  0x8a   :  { %544 = vmatpush2.msra.mxu0 %v243_v13 }
  0x8b   :  { %545 = vmatprep.subr.mxu0 %v242_v14 }
  0x8c   :  { %546 = vmatpush2.msra.mxu0 %v241_v15 }
  0x8d   :  { %547 = vmatprep.subr.mxu0 %v240_v16 }
  0x8e   :  { %548 = vmatpush2.msra.mxu0 %v239_v17 }
  0x8f   :  { %549 = vmatprep.subr.mxu0 %v238_v18 }
  0x90   :  { %550 = vmatpush2.msra.mxu0 %v237_v19 }
  0x91   :  { %551 = vmatprep.subr.mxu0 %v236_v20 }
  0x92   :  { %552 = vmatpush2.msra.mxu0 %v235_v21 }
  0x93   :  { %553 = vmatprep.subr.mxu0 %v234_v22 }
  0x94   :  { %554 = vmatpush2.msra.mxu0 %v233_v23 }
  0x95   :  { %555 = vmatprep.subr.mxu0 %v232_v24 }
  0x96   :  { %556 = vmatpush2.msra.mxu0 %v231_v25 }
  0x97   :  { %557 = vmatprep.subr.mxu0 %v230_v26 }
  0x98   :  { %558 = vmatpush2.msra.mxu0 %v229_v27  ;;  %v770_v27 = vld [vmem:[%s1235_s5 + $0x78] sm:$0xff] }
  0x99   :  { %559 = vmatprep.subr.mxu0 %v228_v28  ;;  %v769_v28 = vld [vmem:[%s1235_s5 + $0x70] sm:$0xff] }
  0x9a   :  { %560 = vmatpush2.msra.mxu0 %v227_v29  ;;  %v768_v29 = vld [vmem:[%s1235_s5 + $0x68] sm:$0xff] }
  0x9b   :  { %561 = vmatprep.subr.mxu0 %v226_v30  ;;  %v767_v30 = vld [vmem:[%s1235_s5 + $0x60] sm:$0xff] }
  0x9c   :  { %562 = vmatpush2.msra.mxu0 %v225_v31  ;;  %v766_v31 = vld [vmem:[%s1235_s5 + $0x58] sm:$0xff] }
  0x9d   :  { %563 = vmatprep.subr.mxu0 %v224_v32  ;;  %v765_v32 = vld [vmem:[%s1235_s5 + $0x50] sm:$0xff] }
  0x9e   :  { %564 = vmatpush2.msra.mxu0 %v223_v33  ;;  %v764_v33 = vld [vmem:[%s1235_s5 + $0x48] sm:$0xff] }
  0x9f   :  { %566 = vmatmul.mubr.f32.vlgmr.msra.gmra.mxu0 %v347_v34  ;;  %v763_v34 = vld [vmem:[%s1235_s5 + $0x40] sm:$0xff] }
 0x11e   :  { %v425_v8 = vpop.f32.mrf.mxu0 }
 0x11f   :  { %v426_v13 = vadd.f32 %v425_v8, %v264_v9 }
 0x120   :  { %v427_v11 = vpop.f32.mrf.mxu0 }
 0x121   :  { %v496_v12 = vpop.f32.mrf.mxu1  ;;  %v428_v14 = vadd.f32 %v427_v11, %v268_v10 }
 0x122   :  { %v497_v16 = vadd.f32 %v496_v12, %v426_v13 }
 0x123   :  { %v498_v15 = vpop.f32.mrf.mxu1 }
 0x124   :  { %v499_v19 = vadd.f32 %v498_v15, %v428_v14 }
 0x128   :  { %v638_v18 = vpop.f32.mrf.mxu1 }
 0x12a   :  { %v640_v24 = vpop.f32.mrf.mxu1 }
 0x15f   :  { %v567_v17 = vpop.f32.mrf.mxu0 }
 0x160   :  { %v568_v20 = vadd.f32 %v567_v17, %v497_v16 }
 0x161   :  { %v569_v21 = vpop.f32.mrf.mxu0 }
 0x162   :  { %v570_v22 = vadd.f32 %v569_v21, %v499_v19  ;;  %v639_v23 = vadd.f32 %v638_v18, %v568_v20 }
 0x164   :  { %v641_v25 = vadd.f32 %v640_v24, %v570_v22  ;;  %v643_v38 = vmul.f32 %v639_v23, %v639_v23 }
 0x166   :  { %v644_v26 = vmul.f32 %v641_v25, %v641_v25 }
 0x168   :  { %748 = vmatprep.mubr.f32.mxu1 %v644_v26 }
 0x169   :  { %749 = vmatmul.mubr.f32.vlgmr.msra.gmra.mxu1 %v643_v38 }
 0x16a   :  { %923 = vmatpush3.msra.mxu1 %v770_v27  ;;  %954 = vmatprep.mubr.msk.f32.mxu1 %vm1055_vm1, %v1054_v42 }
 0x16b   :  { %924 = vmatprep.subr.mxu1 %v1054_v42 }
 0x16c   :  { %925 = vmatpush3.msra.mxu1 %v769_v28 }
 0x16d   :  { %926 = vmatprep.subr.mxu1 %v1054_v42 }
 0x16e   :  { %927 = vmatpush3.msra.mxu1 %v768_v29 }
 0x16f   :  { %928 = vmatprep.subr.mxu1 %v1054_v42 }
 0x170   :  { %929 = vmatpush3.msra.mxu1 %v767_v30 }
 0x171   :  { %930 = vmatprep.subr.mxu1 %v1054_v42 }
 0x172   :  { %931 = vmatpush3.msra.mxu1 %v766_v31 }
 0x173   :  { %932 = vmatprep.subr.mxu1 %v1054_v42 }
 0x174   :  { %933 = vmatpush3.msra.mxu1 %v765_v32 }
 0x175   :  { %934 = vmatprep.subr.mxu1 %v1054_v42 }
 0x176   :  { %935 = vmatpush3.msra.mxu1 %v764_v33 }
 0x177   :  { %936 = vmatprep.subr.mxu1 %v1054_v42 }
 0x178   :  { %937 = vmatpush3.msra.mxu1 %v763_v34 }
 0x179   :  { %938 = vmatprep.subr.mxu1 %v1054_v42 }
 0x17a   :  { %939 = vmatpush3.msra.mxu1 %v762_v36 }
 0x17b   :  { %940 = vmatprep.subr.mxu1 %v1054_v42 }
 0x17c   :  { %941 = vmatpush3.msra.mxu1 %v761_v37 }
 0x17d   :  { %942 = vmatprep.subr.mxu1 %v1054_v42 }
 0x17e   :  { %943 = vmatpush3.msra.mxu1 %v760_v40 }
 0x17f   :  { %944 = vmatprep.subr.mxu1 %v1054_v42 }
 0x180   :  { %945 = vmatpush3.msra.mxu1 %v759_v41 }
 0x181   :  { %946 = vmatprep.subr.mxu1 %v1054_v42 }
 0x182   :  { %947 = vmatpush3.msra.mxu1 %v758_v43 }
 0x183   :  { %948 = vmatprep.subr.mxu1 %v1054_v42 }
 0x184   :  { %949 = vmatpush3.msra.mxu1 %v757_v44 }
 0x185   :  { %950 = vmatprep.subr.mxu1 %v1054_v42 }
 0x186   :  { %951 = vmatpush3.msra.mxu1 %v756_v45 }
 0x187   :  { %952 = vmatprep.subr.mxu1 %v1054_v42 }
 0x188   :  { %953 = vmatpush3.msra.mxu1 %v755_v46 }
 0x229   :  { %v902_v47 = vpop.f32.mrf.mxu1 }
 0x22b   :  { %v903_v39 = vpop.f32.mrf.mxu1 }
 0x22c   :  { %v904_v48 = vadd.f32 %v903_v39, %v902_v47 }
 0x22e   :  { %v751_v49 = vadd.f32 %v904_v48, %v868_v35 }
 0x230   :  { %v754_v50 = vmul.f32 %v751_v49, %v751_v49 }
 0x232   :  { %955 = vmatmul.mubr.f32.vlgmr.msra.gmra.mxu1 %v754_v50 }
 0x2f2   :  { %v844_v52 = vpop.f32.mrf.mxu1 }
 0x2f3   :  { %v845_v53 = vadd.f32 %v869_v51, %v844_v52 }
 0x2f4   :  { %v956_v54 = vpop.f32.mrf.mxu1 }
 0x2f5   :  { %848 = vst [vmem:[#allocation7] sm:$0xff] %v845_v53 }
 0x2f6   :  { %853 = vsyncadd [#allocation4], 96  ;;  %s1056_s5 = smov [#allocation7]  }
 0x2f7   :  { %s854_s1 = sshll.u32 %s1056_s5, 4  ;;  %s855_s1 = int_to_ptr.vmem [resolvable:$true] %s854_s1 }
 0x2f8   :  { %s1021_s3 = scalar_lea.vmem %s855_s1, 32  ;;  %s1025_s4 = scalar_lea.vmem %s855_s1, 128 }
 0x2f9   :  { %p1022_p10 = scmp.ne.s32.totalorder %s855_s1, %s1021_s3  ;;  %p1026_p11 = scmp.lt.s32.totalorder %s855_s1, %s855_s1 }
 0x2fa   :  { %p1027_p12 = scmp.lt.s32.totalorder %s1025_s4, %s1021_s3 }
 0x2fc   :  { %p1028_p13 = por %p1027_p12, %p1026_p11 }
 0x2fe   :  { %p1029_p0 = pnand %p1028_p13, %p1022_p10 }
 0x300   :  { %1032 = shalt.err (!%p1029_p0)
}
 0x301   :  { %s1057_s15 = smov 32   ;;  %s1058_s16 = smov 2  }
 0x302   :  { %860 = dma.vmem_to_hbm [thread:$0]  %s855_s1, 32, %s1237_s7, [#allocation4], %s1057_s15, %s1057_s15, %s1058_s16  }
 0x303   :  { %1045 = dma.done.wait [#allocation4], 128  }
 0x304   :  { %1046 = vsyncadd [#allocation4], 4294967168 }
 0x305   :  { %864 = vsyncpa [#allocation3], 1 }
 0x306   :  { %865 = vsyncpa [#allocation6], 1 }
 0x307   :  { %866 = vsyncpa [#allocation4], 1 }

</bundles_post_ra>
